<compile_context>
chip_gen: v6e
topology: v6e:2x2x1
jax: 0.10.0
libtpu: 0.0.40
codegen_flags: <defaults>
</compile_context>

<pallas_src>
import jax
import jax.numpy as jnp
from jax.experimental import pallas as pl
from jax.experimental.pallas import tpu as pltpu


def _num_tensorcores():
    """2 on v7x (2 TensorCores/chip); 1 on v5e/v6e.  Conservative default is 1."""
    try:
        kind = jax.devices()[0].device_kind.lower()
    except Exception:
        return 1
    return 2 if "v7" in kind else 1


def _ra_body(q_seq, kv_seq, mask, wv_ref, wvec_ref, s0, bg):
    """One RelationAttention block with the +q_seq residual fused.

    q_seq:  (Bb, C, H) f32   query-side sequence (residual source)
    kv_seq: (Bb, L, H) f32   key/value-side sequence
    mask:   (Bb, 1, L) f32 or None
    wv_ref: (H, H) bf16      value projection weight (MXU operand)
    wvec_ref: (5, H) f32     packed rows [wq@ws1, wk@ws2^T, wg1, wg2, bv]
    s0, bg: f32 scalars      folded score bias, gate bias
    """
    Bb, L, H = kv_seq.shape

    a_row = wvec_ref[0:1, :]     # score, query side
    c_row = wvec_ref[1:2, :]     # score, key side
    g1_row = wvec_ref[2:3, :]    # gate, "out" side
    g2_row = wvec_ref[3:4, :]    # gate, "q" side
    bv_row = wvec_ref[4:5, :]    # value bias

    # Value projection: the only HxH matmul.  (Bb,L,H)->(Bb*L,H) is a no-copy
    # sublane merge (L % 8 == 0); bf16 operands, f32 MXU accumulation.
    kv2d = kv_seq.reshape(Bb * L, H).astype(jnp.bfloat16)
    v = (jnp.dot(kv2d, wv_ref[...], preferred_element_type=jnp.float32)
         .reshape(Bb, L, H) + bv_row)

    # Rank-1 score fold (VPU multiplies + XLU lane reductions, all f32):
    #   score[b,c,l] = q_c . a + kv_l . c + s0
    sq = jnp.sum(q_seq * a_row, axis=-1, keepdims=True)      # (Bb, C, 1)
    sk = jnp.sum(kv_seq * c_row, axis=-1)                    # (Bb, L)
    score = sq + sk[:, None, :] + s0                         # (Bb, C, L)
    if mask is not None:
        score = jnp.where(mask != 0.0, score, -1.0e9)

    # Softmax over keys (f32; EUP approx reciprocal for the denominator).
    score = score - jnp.max(score, axis=-1, keepdims=True)
    e = jnp.exp(score)
    attn = e * pl.reciprocal(jnp.sum(e, axis=-1, keepdims=True), approx=True)

    # Attention matmul on the MXU (bf16 operands, f32 accumulation) + residual.
    out = jnp.einsum("bcl,bld->bcd", attn.astype(jnp.bfloat16),
                     v.astype(jnp.bfloat16),
                     preferred_element_type=jnp.float32) + q_seq

    # gate(cat([out, q])) as a single merged cross-lane reduction.
    g = jax.nn.sigmoid(jnp.sum(out * g1_row + q_seq * g2_row,
                               axis=-1, keepdims=True) + bg)

    # Gated mix with the GATLayer residual fused in:
    #   (g*out + (1-g)*q) + q == g*out + (2-g)*q
    return g * out + (2.0 - g) * q_seq


def _make_gat_kernel(has_mask):
    def kernel(*refs):
        if has_mask:
            (x_ref, p_ref, mask_ref, wv1_ref, wvec1_ref,
             wv2_ref, wvec2_ref, scal_ref, xo_ref, po_ref) = refs
            mask = mask_ref[...]                    # (Bb, 1, Lx)
        else:
            (x_ref, p_ref, wv1_ref, wvec1_ref,
             wv2_ref, wvec2_ref, scal_ref, xo_ref, po_ref) = refs
            mask = None

        x = x_ref[...]                              # (Bb, Lx, H)
        p = p_ref[...]                              # (Bb, Lp, H)

        # RA1: x_out = ra1(x, p) + x  (never masked inside GATLayer.forward).
        x_out = _ra_body(x, p, None, wv1_ref, wvec1_ref,
                         scal_ref[0], scal_ref[1])
        xo_ref[...] = x_out

        # RA2: p_out = ra2(p, x_out, mask) + p -- x_out is consumed straight
        # from registers/VMEM, no HBM round trip between the two blocks.
        p_out = _ra_body(p, x_out, mask, wv2_ref, wvec2_ref,
                         scal_ref[2], scal_ref[3])
        po_ref[...] = p_out
    return kernel


def _pack_ra_params(prm):
    """Fold q/k projections into rank-1 score vectors; pack per-RA params."""
    # q = p@wq + bq and k = x@wk + bk are only ever contracted against the
    # rank-1 score weights:  q.ws1 = p.(wq@ws1) + bq@ws1,  k.ws2 = x.(wk@ws2^T).
    a = (prm["wq"] @ prm["ws1"])[:, 0]                           # (H,)
    c = (prm["wk"] @ prm["ws2"].T)[:, 0]                         # (H,)
    wvec = jnp.stack([a, c, prm["wg1"][:, 0], prm["wg2"][:, 0],
                      prm["bv"][0]], axis=0).astype(jnp.float32)  # (5, H)
    s0 = ((prm["bq"] @ prm["ws1"])[0, 0] + (prm["bk"] @ prm["ws2"].T)[0, 0]
          + prm["bs"][0, 0])
    wv = prm["wv"].astype(jnp.bfloat16)                          # MXU operand
    return wv, wvec, s0, prm["bg"][0, 0]


def gat_layer(x, p, mask, prm1, prm2):
    """GATLayer.forward(x, p, mask) -> (x, p), fused into one pallas_call."""
    B, Lx, H = x.shape
    Lp = p.shape[1]
    has_mask = mask is not None

    wv1, wvec1, s01, bg1 = _pack_ra_params(prm1)
    wv2, wvec2, s02, bg2 = _pack_ra_params(prm2)
    scal = jnp.stack([s01, bg1, s02, bg2]).astype(jnp.float32)   # SMEM scalars

    # One grid step per TensorCore: 2 "parallel" steps on v7x, 1 fat step on
    # single-TC v5e/v6e (extra serial steps there are pure per-step overhead).
    nb = 2 if (_num_tensorcores() >= 2 and B >= 2 and B % 2 == 0) else 1
    Bb = B // nb

    in_specs = [
        pl.BlockSpec((Bb, Lx, H), lambda b: (b, 0, 0)),      # x
        pl.BlockSpec((Bb, Lp, H), lambda b: (b, 0, 0)),      # p
    ]
    operands = [x.astype(jnp.float32), p.astype(jnp.float32)]
    if has_mask:
        in_specs.append(pl.BlockSpec((Bb, 1, Lx), lambda b: (b, 0, 0)))
        operands.append(mask.astype(jnp.float32).reshape(B, 1, Lx))
    in_specs += [
        pl.BlockSpec((H, H), lambda b: (0, 0)),              # wv1 (bf16)
        pl.BlockSpec((5, H), lambda b: (0, 0)),              # wvec1 (f32)
        pl.BlockSpec((H, H), lambda b: (0, 0)),              # wv2 (bf16)
        pl.BlockSpec((5, H), lambda b: (0, 0)),              # wvec2 (f32)
        pl.BlockSpec(memory_space=pltpu.MemorySpace.SMEM),   # [s0_1,bg_1,s0_2,bg_2]
    ]
    operands += [wv1, wvec1, wv2, wvec2, scal]

    # Advisory cost hint for the XLA scheduler (fused RA1 + RA2).
    flops = int(2 * B * H * H * (Lx + Lp)        # two value projections
                + 4 * B * Lx * Lp * H            # two attention matmuls
                + 16 * B * (Lx + Lp) * H)        # rank-1 scores + gates
    transc = int(2 * B * Lx * Lp + 2 * B * (Lx + Lp))
    bytes_accessed = int(4 * (2 * B * (Lx + Lp) * H + B * Lx + 10 * H + 4)
                         + 2 * (2 * H * H))

    x_out, p_out = pl.pallas_call(
        _make_gat_kernel(has_mask),
        out_shape=(jax.ShapeDtypeStruct((B, Lx, H), jnp.float32),
                   jax.ShapeDtypeStruct((B, Lp, H), jnp.float32)),
        grid=(nb,),
        in_specs=in_specs,
        out_specs=(pl.BlockSpec((Bb, Lx, H), lambda b: (b, 0, 0)),
                   pl.BlockSpec((Bb, Lp, H), lambda b: (b, 0, 0))),
        compiler_params=pltpu.CompilerParams(
            dimension_semantics=("parallel",)),
        cost_estimate=pl.CostEstimate(flops=flops, transcendentals=transc,
                                      bytes_accessed=bytes_accessed),
    )(*operands)
    return x_out, p_out


def init_ra_params(key, H):
    """Deterministic init of one RelationAttention's parameters."""
    ks = jax.random.split(key, 12)
    s = 1.0 / jnp.sqrt(H)
    u = lambda k, shape: jax.random.uniform(k, shape, jnp.float32, -s, s)
    return dict(
        wq=u(ks[0], (H, H)), bq=u(ks[1], (1, H)),
        wk=u(ks[2], (H, H)), bk=u(ks[3], (1, H)),
        wv=u(ks[4], (H, H)), bv=u(ks[5], (1, H)),
        ws1=u(ks[6], (H, 1)), ws2=u(ks[7], (1, H)), bs=u(ks[8], (1, 1)),
        wg1=u(ks[9], (H, 1)), wg2=u(ks[10], (H, 1)), bg=u(ks[11], (1, 1)),
    )


def relation_attention_ref(p, x, mask, prm):
    """Pure-JAX reference mirroring the PyTorch semantics (no residual)."""
    q = p @ prm["wq"] + prm["bq"]
    k = x @ prm["wk"] + prm["bk"]
    v = x @ prm["wv"] + prm["bv"]
    sq = jnp.einsum("bch,ho->bco", q, prm["ws1"])[..., 0]        # (B, C)
    sk = jnp.einsum("blh,oh->blo", k, prm["ws2"])[..., 0]        # (B, L)
    score = sq[:, :, None] + sk[:, None, :] + prm["bs"][0, 0]
    if mask is not None:
        inv = 1.0 - mask[:, None, :]
        score = jnp.where(inv == 1.0, -1.0e9, score)
    attn = jax.nn.softmax(score, axis=2)
    out = jnp.einsum("bcl,bld->bcd", attn, v) + p
    g = jax.nn.sigmoid(jnp.einsum("bch,ho->bco", out, prm["wg1"])[..., 0] +
                       jnp.einsum("bch,ho->bco", p, prm["wg2"])[..., 0] +
                       prm["bg"][0, 0])[..., None]
    return g * out + (1.0 - g) * p


if __name__ == "__main__":
    key = jax.random.PRNGKey(0)
    B, Lx, Lp, H = 2, 8, 8, 32
    kx, kp, k1, k2 = jax.random.split(key, 4)
    x = jax.random.normal(kx, (B, Lx, H), jnp.float32)
    p = jax.random.normal(kp, (B, Lp, H), jnp.float32)
    lengths = jnp.array([Lx, Lx - 3])
    mask = (jnp.arange(Lx)[None, :] < lengths[:, None]).astype(jnp.float32)  # (B, Lx)

    prm1 = init_ra_params(k1, H)
    prm2 = init_ra_params(k2, H)

    x_out, p_out = gat_layer(x, p, mask, prm1, prm2)
    jax.block_until_ready((x_out, p_out))

    # Verify against the pure-JAX reference chain (residuals applied outside,
    # exactly as in the PyTorch GATLayer).
    x_ref = relation_attention_ref(x, p, None, prm1) + x
    p_ref = relation_attention_ref(p, x_ref, mask, prm2) + p
    assert x_out.shape == (B, Lx, H) and p_out.shape == (B, Lp, H)
    # bf16 MXU operands + EUP approx reciprocal => slightly looser tolerance.
    assert jnp.allclose(x_out, x_ref, atol=5e-2, rtol=5e-2)
    assert jnp.allclose(p_out, p_ref, atol=5e-2, rtol=5e-2)

    print("KERNEL_OK")
</pallas_src>

<mosaic_0001>
module attributes {stable_mosaic.version = 11 : i64} {
  func.func @kernel(%arg0: i32, %arg1: memref<2x8x32xf32, #tpu.memory_space<vmem>>, %arg2: memref<2x8x32xf32, #tpu.memory_space<vmem>>, %arg3: memref<2x1x8xf32, #tpu.memory_space<vmem>>, %arg4: memref<32x32xbf16, #tpu.memory_space<vmem>>, %arg5: memref<5x32xf32, #tpu.memory_space<vmem>>, %arg6: memref<32x32xbf16, #tpu.memory_space<vmem>>, %arg7: memref<5x32xf32, #tpu.memory_space<vmem>>, %arg8: memref<4xf32, #tpu.memory_space<smem>>, %arg9: memref<2x8x32xf32, #tpu.memory_space<vmem>>, %arg10: memref<2x8x32xf32, #tpu.memory_space<vmem>>) attributes {dimension_semantics = [#tpu.dimension_semantics<parallel>], iteration_bounds = array<i64: 1>, scalar_prefetch = 0 : i64, scratch_operands = 0 : i64, tpu.core_type = #tpu.core_type<tc>, window_params = [{transform_indices = @transform_0, window_bounds = array<i64: 2, 8, 32>}, {transform_indices = @transform_1, window_bounds = array<i64: 2, 8, 32>}, {transform_indices = @transform_2, window_bounds = array<i64: 2, 1, 8>}, {pipeline_mode = #tpu.pipeline_mode<synchronous>, transform_indices = @transform_3, window_bounds = array<i64: 32, 32>}, {pipeline_mode = #tpu.pipeline_mode<synchronous>, transform_indices = @transform_4, window_bounds = array<i64: 5, 32>}, {pipeline_mode = #tpu.pipeline_mode<synchronous>, transform_indices = @transform_5, window_bounds = array<i64: 32, 32>}, {pipeline_mode = #tpu.pipeline_mode<synchronous>, transform_indices = @transform_6, window_bounds = array<i64: 5, 32>}, {transform_indices = @transform_7, window_bounds = array<i64: 4>}, {transform_indices = @transform_8, window_bounds = array<i64: 2, 8, 32>}, {transform_indices = @transform_9, window_bounds = array<i64: 2, 8, 32>}]} {
    %c0 = arith.constant 0 : index
    %c0_0 = arith.constant 0 : index
    %c0_1 = arith.constant 0 : index
    %0 = vector.load %arg3[%c0, %c0_0, %c0_1] : memref<2x1x8xf32, #tpu.memory_space<vmem>>, vector<2x1x8xf32>
    %c0_2 = arith.constant 0 : index
    %c0_3 = arith.constant 0 : index
    %c0_4 = arith.constant 0 : index
    %1 = vector.load %arg1[%c0_2, %c0_3, %c0_4] : memref<2x8x32xf32, #tpu.memory_space<vmem>>, vector<2x8x32xf32>
    %c0_5 = arith.constant 0 : index
    %c0_6 = arith.constant 0 : index
    %c0_7 = arith.constant 0 : index
    %2 = vector.load %arg2[%c0_5, %c0_6, %c0_7] : memref<2x8x32xf32, #tpu.memory_space<vmem>>, vector<2x8x32xf32>
    %c0_8 = arith.constant 0 : index
    %3 = memref.load %arg8[%c0_8] : memref<4xf32, #tpu.memory_space<smem>>
    %c1 = arith.constant 1 : index
    %4 = memref.load %arg8[%c1] : memref<4xf32, #tpu.memory_space<smem>>
    %c0_9 = arith.constant 0 : index
    %c0_10 = arith.constant 0 : index
    %5 = vector.load %arg5[%c0_9, %c0_10] : memref<5x32xf32, #tpu.memory_space<vmem>>, vector<1x32xf32>
    %c1_11 = arith.constant 1 : index
    %c0_12 = arith.constant 0 : index
    %6 = vector.load %arg5[%c1_11, %c0_12] : memref<5x32xf32, #tpu.memory_space<vmem>>, vector<1x32xf32>
    %c2 = arith.constant 2 : index
    %c0_13 = arith.constant 0 : index
    %7 = vector.load %arg5[%c2, %c0_13] : memref<5x32xf32, #tpu.memory_space<vmem>>, vector<1x32xf32>
    %c3 = arith.constant 3 : index
    %c0_14 = arith.constant 0 : index
    %8 = vector.load %arg5[%c3, %c0_14] : memref<5x32xf32, #tpu.memory_space<vmem>>, vector<1x32xf32>
    %c4 = arith.constant 4 : index
    %c0_15 = arith.constant 0 : index
    %9 = vector.load %arg5[%c4, %c0_15] : memref<5x32xf32, #tpu.memory_space<vmem>>, vector<1x32xf32>
    %10 = vector.shape_cast %2 : vector<2x8x32xf32> to vector<16x32xf32>
    %11 = arith.truncf %10 : vector<16x32xf32> to vector<16x32xbf16>
    %c0_16 = arith.constant 0 : index
    %c0_17 = arith.constant 0 : index
    %12 = vector.load %arg4[%c0_16, %c0_17] : memref<32x32xbf16, #tpu.memory_space<vmem>>, vector<32x32xbf16>
    %cst = arith.constant dense<0.000000e+00> : vector<16x32xf32>
    %13 = tpu.matmul %11, %12, %cst {dimension_numbers = #tpu.dot_dimension_numbers<[1], [0], [0], [1], [0, 0, 1, 1], [], []>} : vector<16x32xbf16>, vector<32x32xbf16>, vector<16x32xf32> -> vector<16x32xf32>
    %14 = vector.shape_cast %13 : vector<16x32xf32> to vector<2x8x32xf32>
    %15 = vector.shape_cast %9 : vector<1x32xf32> to vector<1x1x32xf32>
    %16 = vector.broadcast %15 : vector<1x1x32xf32> to vector<2x8x32xf32>
    %17 = arith.addf %14, %16 : vector<2x8x32xf32>
    %18 = vector.shape_cast %5 : vector<1x32xf32> to vector<1x1x32xf32>
    %19 = vector.broadcast %18 : vector<1x1x32xf32> to vector<2x8x32xf32>
    %20 = arith.mulf %1, %19 : vector<2x8x32xf32>
    %cst_18 = arith.constant dense<0.000000e+00> : vector<2x8xf32>
    %21 = vector.multi_reduction <add>, %20, %cst_18 [2] : vector<2x8x32xf32> to vector<2x8xf32>
    %22 = vector.shape_cast %21 : vector<2x8xf32> to vector<2x8x1xf32>
    %23 = vector.shape_cast %6 : vector<1x32xf32> to vector<1x1x32xf32>
    %24 = vector.broadcast %23 : vector<1x1x32xf32> to vector<2x8x32xf32>
    %25 = arith.mulf %2, %24 : vector<2x8x32xf32>
    %cst_19 = arith.constant dense<0.000000e+00> : vector<2x8xf32>
    %26 = vector.multi_reduction <add>, %25, %cst_19 [2] : vector<2x8x32xf32> to vector<2x8xf32>
    %27 = vector.shape_cast %26 : vector<2x8xf32> to vector<2x1x8xf32>
    %28 = vector.broadcast %22 : vector<2x8x1xf32> to vector<2x8x8xf32>
    %29 = vector.broadcast %27 : vector<2x1x8xf32> to vector<2x8x8xf32>
    %30 = arith.addf %28, %29 : vector<2x8x8xf32>
    %31 = vector.broadcast %3 : f32 to vector<2x8x8xf32>
    %32 = arith.addf %30, %31 : vector<2x8x8xf32>
    %cst_20 = arith.constant dense<0xFF800000> : vector<2x8xf32>
    %33 = vector.multi_reduction <maximumf>, %32, %cst_20 [2] : vector<2x8x8xf32> to vector<2x8xf32>
    %34 = vector.shape_cast %33 : vector<2x8xf32> to vector<2x8x1xf32>
    %35 = vector.broadcast %34 : vector<2x8x1xf32> to vector<2x8x8xf32>
    %36 = arith.subf %32, %35 : vector<2x8x8xf32>
    %37 = math.exp %36 : vector<2x8x8xf32>
    %cst_21 = arith.constant dense<0.000000e+00> : vector<2x8xf32>
    %38 = vector.multi_reduction <add>, %37, %cst_21 [2] : vector<2x8x8xf32> to vector<2x8xf32>
    %39 = vector.shape_cast %38 : vector<2x8xf32> to vector<2x8x1xf32>
    %40 = tpu.reciprocal %39 {approx = true} : vector<2x8x1xf32> -> vector<2x8x1xf32>
    %41 = vector.broadcast %40 : vector<2x8x1xf32> to vector<2x8x8xf32>
    %42 = arith.mulf %37, %41 : vector<2x8x8xf32>
    %43 = arith.truncf %42 : vector<2x8x8xf32> to vector<2x8x8xbf16>
    %44 = arith.truncf %17 : vector<2x8x32xf32> to vector<2x8x32xbf16>
    "tpu.trace_start"() <{level = 10 : i32, message = "bcl,bld->bcd"}> : () -> ()
    %cst_22 = arith.constant dense<0.000000e+00> : vector<2x8x32xf32>
    %45 = tpu.matmul %43, %44, %cst_22 {dimension_numbers = #tpu.dot_dimension_numbers<[2], [1], [1], [2], [0, 0, 0, 1, 1, 2], [0], [0]>} : vector<2x8x8xbf16>, vector<2x8x32xbf16>, vector<2x8x32xf32> -> vector<2x8x32xf32>
    "tpu.trace_stop"() : () -> ()
    %46 = arith.addf %45, %1 : vector<2x8x32xf32>
    %47 = vector.shape_cast %7 : vector<1x32xf32> to vector<1x1x32xf32>
    %48 = vector.broadcast %47 : vector<1x1x32xf32> to vector<2x8x32xf32>
    %49 = arith.mulf %46, %48 : vector<2x8x32xf32>
    %50 = vector.shape_cast %8 : vector<1x32xf32> to vector<1x1x32xf32>
    %51 = vector.broadcast %50 : vector<1x1x32xf32> to vector<2x8x32xf32>
    %52 = arith.mulf %1, %51 : vector<2x8x32xf32>
    %53 = arith.addf %49, %52 : vector<2x8x32xf32>
    %cst_23 = arith.constant dense<0.000000e+00> : vector<2x8xf32>
    %54 = vector.multi_reduction <add>, %53, %cst_23 [2] : vector<2x8x32xf32> to vector<2x8xf32>
    %55 = vector.shape_cast %54 : vector<2x8xf32> to vector<2x8x1xf32>
    %56 = vector.broadcast %4 : f32 to vector<2x8x1xf32>
    %57 = arith.addf %55, %56 : vector<2x8x1xf32>
    %58 = arith.negf %57 : vector<2x8x1xf32>
    %59 = math.exp %58 : vector<2x8x1xf32>
    %cst_24 = arith.constant 1.000000e+00 : f32
    %60 = vector.broadcast %cst_24 : f32 to vector<2x8x1xf32>
    %61 = arith.addf %60, %59 : vector<2x8x1xf32>
    %62 = arith.divf %60, %61 : vector<2x8x1xf32>
    %63 = vector.broadcast %62 : vector<2x8x1xf32> to vector<2x8x32xf32>
    %64 = arith.mulf %63, %46 : vector<2x8x32xf32>
    %cst_25 = arith.constant 2.000000e+00 : f32
    %65 = vector.broadcast %cst_25 : f32 to vector<2x8x1xf32>
    %66 = arith.subf %65, %62 : vector<2x8x1xf32>
    %67 = vector.broadcast %66 : vector<2x8x1xf32> to vector<2x8x32xf32>
    %68 = arith.mulf %67, %1 : vector<2x8x32xf32>
    %69 = arith.addf %64, %68 : vector<2x8x32xf32>
    %c0_26 = arith.constant 0 : index
    %c0_27 = arith.constant 0 : index
    %c0_28 = arith.constant 0 : index
    %70 = vector.load %arg9[%c0_26, %c0_27, %c0_28] : memref<2x8x32xf32, #tpu.memory_space<vmem>>, vector<2x8x32xf32>
    tpu.vector_store %arg9[%c0_26, %c0_27, %c0_28], %69 {strides = array<i32>} : memref<2x8x32xf32, #tpu.memory_space<vmem>>, vector<2x8x32xf32>,
    %c2_29 = arith.constant 2 : index
    %71 = memref.load %arg8[%c2_29] : memref<4xf32, #tpu.memory_space<smem>>
    %c3_30 = arith.constant 3 : index
    %72 = memref.load %arg8[%c3_30] : memref<4xf32, #tpu.memory_space<smem>>
    %c0_31 = arith.constant 0 : index
    %c0_32 = arith.constant 0 : index
    %73 = vector.load %arg7[%c0_31, %c0_32] : memref<5x32xf32, #tpu.memory_space<vmem>>, vector<1x32xf32>
    %c1_33 = arith.constant 1 : index
    %c0_34 = arith.constant 0 : index
    %74 = vector.load %arg7[%c1_33, %c0_34] : memref<5x32xf32, #tpu.memory_space<vmem>>, vector<1x32xf32>
    %c2_35 = arith.constant 2 : index
    %c0_36 = arith.constant 0 : index
    %75 = vector.load %arg7[%c2_35, %c0_36] : memref<5x32xf32, #tpu.memory_space<vmem>>, vector<1x32xf32>
    %c3_37 = arith.constant 3 : index
    %c0_38 = arith.constant 0 : index
    %76 = vector.load %arg7[%c3_37, %c0_38] : memref<5x32xf32, #tpu.memory_space<vmem>>, vector<1x32xf32>
    %c4_39 = arith.constant 4 : index
    %c0_40 = arith.constant 0 : index
    %77 = vector.load %arg7[%c4_39, %c0_40] : memref<5x32xf32, #tpu.memory_space<vmem>>, vector<1x32xf32>
    %78 = vector.shape_cast %69 : vector<2x8x32xf32> to vector<16x32xf32>
    %79 = arith.truncf %78 : vector<16x32xf32> to vector<16x32xbf16>
    %c0_41 = arith.constant 0 : index
    %c0_42 = arith.constant 0 : index
    %80 = vector.load %arg6[%c0_41, %c0_42] : memref<32x32xbf16, #tpu.memory_space<vmem>>, vector<32x32xbf16>
    %cst_43 = arith.constant dense<0.000000e+00> : vector<16x32xf32>
    %81 = tpu.matmul %79, %80, %cst_43 {dimension_numbers = #tpu.dot_dimension_numbers<[1], [0], [0], [1], [0, 0, 1, 1], [], []>} : vector<16x32xbf16>, vector<32x32xbf16>, vector<16x32xf32> -> vector<16x32xf32>
    %82 = vector.shape_cast %81 : vector<16x32xf32> to vector<2x8x32xf32>
    %83 = vector.shape_cast %77 : vector<1x32xf32> to vector<1x1x32xf32>
    %84 = vector.broadcast %83 : vector<1x1x32xf32> to vector<2x8x32xf32>
    %85 = arith.addf %82, %84 : vector<2x8x32xf32>
    %86 = vector.shape_cast %73 : vector<1x32xf32> to vector<1x1x32xf32>
    %87 = vector.broadcast %86 : vector<1x1x32xf32> to vector<2x8x32xf32>
    %88 = arith.mulf %2, %87 : vector<2x8x32xf32>
    %cst_44 = arith.constant dense<0.000000e+00> : vector<2x8xf32>
    %89 = vector.multi_reduction <add>, %88, %cst_44 [2] : vector<2x8x32xf32> to vector<2x8xf32>
    %90 = vector.shape_cast %89 : vector<2x8xf32> to vector<2x8x1xf32>
    %91 = vector.shape_cast %74 : vector<1x32xf32> to vector<1x1x32xf32>
    %92 = vector.broadcast %91 : vector<1x1x32xf32> to vector<2x8x32xf32>
    %93 = arith.mulf %69, %92 : vector<2x8x32xf32>
    %cst_45 = arith.constant dense<0.000000e+00> : vector<2x8xf32>
    %94 = vector.multi_reduction <add>, %93, %cst_45 [2] : vector<2x8x32xf32> to vector<2x8xf32>
    %95 = vector.shape_cast %94 : vector<2x8xf32> to vector<2x1x8xf32>
    %96 = vector.broadcast %90 : vector<2x8x1xf32> to vector<2x8x8xf32>
    %97 = vector.broadcast %95 : vector<2x1x8xf32> to vector<2x8x8xf32>
    %98 = arith.addf %96, %97 : vector<2x8x8xf32>
    %99 = vector.broadcast %71 : f32 to vector<2x8x8xf32>
    %100 = arith.addf %98, %99 : vector<2x8x8xf32>
    %cst_46 = arith.constant 0.000000e+00 : f32
    %101 = vector.broadcast %cst_46 : f32 to vector<2x1x8xf32>
    %102 = arith.cmpf one, %0, %101 : vector<2x1x8xf32>
    %cst_47 = arith.constant -1.000000e+09 : f32
    %103 = vector.shape_cast %102 : vector<2x1x8xi1> to vector<2x1x8xi1>
    %104 = vector.broadcast %103 : vector<2x1x8xi1> to vector<2x8x8xi1>
    %105 = vector.broadcast %cst_47 : f32 to vector<2x8x8xf32>
    %106 = arith.select %104, %100, %105 : vector<2x8x8xi1>, vector<2x8x8xf32>
    %cst_48 = arith.constant dense<0xFF800000> : vector<2x8xf32>
    %107 = vector.multi_reduction <maximumf>, %106, %cst_48 [2] : vector<2x8x8xf32> to vector<2x8xf32>
    %108 = vector.shape_cast %107 : vector<2x8xf32> to vector<2x8x1xf32>
    %109 = vector.broadcast %108 : vector<2x8x1xf32> to vector<2x8x8xf32>
    %110 = arith.subf %106, %109 : vector<2x8x8xf32>
    %111 = math.exp %110 : vector<2x8x8xf32>
    %cst_49 = arith.constant dense<0.000000e+00> : vector<2x8xf32>
    %112 = vector.multi_reduction <add>, %111, %cst_49 [2] : vector<2x8x8xf32> to vector<2x8xf32>
    %113 = vector.shape_cast %112 : vector<2x8xf32> to vector<2x8x1xf32>
    %114 = tpu.reciprocal %113 {approx = true} : vector<2x8x1xf32> -> vector<2x8x1xf32>
    %115 = vector.broadcast %114 : vector<2x8x1xf32> to vector<2x8x8xf32>
    %116 = arith.mulf %111, %115 : vector<2x8x8xf32>
    %117 = arith.truncf %116 : vector<2x8x8xf32> to vector<2x8x8xbf16>
    %118 = arith.truncf %85 : vector<2x8x32xf32> to vector<2x8x32xbf16>
    "tpu.trace_start"() <{level = 10 : i32, message = "bcl,bld->bcd"}> : () -> ()
    %cst_50 = arith.constant dense<0.000000e+00> : vector<2x8x32xf32>
    %119 = tpu.matmul %117, %118, %cst_50 {dimension_numbers = #tpu.dot_dimension_numbers<[2], [1], [1], [2], [0, 0, 0, 1, 1, 2], [0], [0]>} : vector<2x8x8xbf16>, vector<2x8x32xbf16>, vector<2x8x32xf32> -> vector<2x8x32xf32>
    "tpu.trace_stop"() : () -> ()
    %120 = arith.addf %119, %2 : vector<2x8x32xf32>
    %121 = vector.shape_cast %75 : vector<1x32xf32> to vector<1x1x32xf32>
    %122 = vector.broadcast %121 : vector<1x1x32xf32> to vector<2x8x32xf32>
    %123 = arith.mulf %120, %122 : vector<2x8x32xf32>
    %124 = vector.shape_cast %76 : vector<1x32xf32> to vector<1x1x32xf32>
    %125 = vector.broadcast %124 : vector<1x1x32xf32> to vector<2x8x32xf32>
    %126 = arith.mulf %2, %125 : vector<2x8x32xf32>
    %127 = arith.addf %123, %126 : vector<2x8x32xf32>
    %cst_51 = arith.constant dense<0.000000e+00> : vector<2x8xf32>
    %128 = vector.multi_reduction <add>, %127, %cst_51 [2] : vector<2x8x32xf32> to vector<2x8xf32>
    %129 = vector.shape_cast %128 : vector<2x8xf32> to vector<2x8x1xf32>
    %130 = vector.broadcast %72 : f32 to vector<2x8x1xf32>
    %131 = arith.addf %129, %130 : vector<2x8x1xf32>
    %132 = arith.negf %131 : vector<2x8x1xf32>
    %133 = math.exp %132 : vector<2x8x1xf32>
    %cst_52 = arith.constant 1.000000e+00 : f32
    %134 = vector.broadcast %cst_52 : f32 to vector<2x8x1xf32>
    %135 = arith.addf %134, %133 : vector<2x8x1xf32>
    %136 = arith.divf %134, %135 : vector<2x8x1xf32>
    %137 = vector.broadcast %136 : vector<2x8x1xf32> to vector<2x8x32xf32>
    %138 = arith.mulf %137, %120 : vector<2x8x32xf32>
    %cst_53 = arith.constant 2.000000e+00 : f32
    %139 = vector.broadcast %cst_53 : f32 to vector<2x8x1xf32>
    %140 = arith.subf %139, %136 : vector<2x8x1xf32>
    %141 = vector.broadcast %140 : vector<2x8x1xf32> to vector<2x8x32xf32>
    %142 = arith.mulf %141, %2 : vector<2x8x32xf32>
    %143 = arith.addf %138, %142 : vector<2x8x32xf32>
    %c0_54 = arith.constant 0 : index
    %c0_55 = arith.constant 0 : index
    %c0_56 = arith.constant 0 : index
    %144 = vector.load %arg10[%c0_54, %c0_55, %c0_56] : memref<2x8x32xf32, #tpu.memory_space<vmem>>, vector<2x8x32xf32>
    tpu.vector_store %arg10[%c0_54, %c0_55, %c0_56], %143 {strides = array<i32>} : memref<2x8x32xf32, #tpu.memory_space<vmem>>, vector<2x8x32xf32>,
    return
  }
  func.func @transform_0(%arg0: i32) -> (i32, i32, i32) {
    %c0_i32 = arith.constant 0 : i32
    %c0_i32_0 = arith.constant 0 : i32
    %c0_i32_1 = arith.constant 0 : i32
    return %arg0, %c0_i32, %c0_i32_0 : i32, i32, i32
  }
  func.func @transform_1(%arg0: i32) -> (i32, i32, i32) {
    %c0_i32 = arith.constant 0 : i32
    %c0_i32_0 = arith.constant 0 : i32
    %c0_i32_1 = arith.constant 0 : i32
    return %arg0, %c0_i32, %c0_i32_0 : i32, i32, i32
  }
  func.func @transform_2(%arg0: i32) -> (i32, i32, i32) {
    %c0_i32 = arith.constant 0 : i32
    %c0_i32_0 = arith.constant 0 : i32
    %c0_i32_1 = arith.constant 0 : i32
    return %arg0, %c0_i32, %c0_i32_0 : i32, i32, i32
  }
  func.func @transform_3(%arg0: i32) -> (i32, i32) {
    %c0_i32 = arith.constant 0 : i32
    %c0_i32_0 = arith.constant 0 : i32
    %c0_i32_1 = arith.constant 0 : i32
    return %c0_i32, %c0_i32_0 : i32, i32
  }
  func.func @transform_4(%arg0: i32) -> (i32, i32) {
    %c0_i32 = arith.constant 0 : i32
    %c0_i32_0 = arith.constant 0 : i32
    %c0_i32_1 = arith.constant 0 : i32
    return %c0_i32, %c0_i32_0 : i32, i32
  }
  func.func @transform_5(%arg0: i32) -> (i32, i32) {
    %c0_i32 = arith.constant 0 : i32
    %c0_i32_0 = arith.constant 0 : i32
    %c0_i32_1 = arith.constant 0 : i32
    return %c0_i32, %c0_i32_0 : i32, i32
  }
  func.func @transform_6(%arg0: i32) -> (i32, i32) {
    %c0_i32 = arith.constant 0 : i32
    %c0_i32_0 = arith.constant 0 : i32
    %c0_i32_1 = arith.constant 0 : i32
    return %c0_i32, %c0_i32_0 : i32, i32
  }
  func.func @transform_7(%arg0: i32) -> i32 {
    %c0_i32 = arith.constant 0 : i32
    %c0_i32_0 = arith.constant 0 : i32
    return %c0_i32 : i32
  }
  func.func @transform_8(%arg0: i32) -> (i32, i32, i32) {
    %c0_i32 = arith.constant 0 : i32
    %c0_i32_0 = arith.constant 0 : i32
    %c0_i32_1 = arith.constant 0 : i32
    return %arg0, %c0_i32, %c0_i32_0 : i32, i32, i32
  }
  func.func @transform_9(%arg0: i32) -> (i32, i32, i32) {
    %c0_i32 = arith.constant 0 : i32
    %c0_i32_0 = arith.constant 0 : i32
    %c0_i32_1 = arith.constant 0 : i32
    return %arg0, %c0_i32, %c0_i32_0 : i32, i32, i32
  }
}

</mosaic_0001>

<bundles_post_ra>
// kernel: tpu_custom_call.1
= control target key start
LH: loop header
LB: loop body
LE: loop exit
PB: predicated region body
PF: predicated region fallthrough
CT: control target
= control target key end

     0   :  { %15 = vsyncpa [#allocation3], 0  ;;  %s1272_s0 = inlined_call_operand.hbm [shape: f32[2,8,32], index: 0, kind: input, shape index: {}]   ;;  %s1273_s1 = inlined_call_operand.hbm [shape: f32[2,8,32], index: 1, kind: input, shape index: {}]   ;;  %s1274_s2 = inlined_call_operand.vmem [shape: f32[2,1,8], index: 2, kind: input, shape index: {}]   ;;  %s1275_s3 = inlined_call_operand.hbm [shape: bf16[32,32], index: 3, kind: input, shape index: {}]   ;;  %s1276_s4 = inlined_call_operand.hbm [shape: f32[5,32], index: 4, kind: input, shape index: {}]   ;;  %s1277_s5 = inlined_call_operand.hbm [shape: bf16[32,32], index: 5, kind: input, shape index: {}]   ;;  %s1278_s6 = inlined_call_operand.vmem [shape: f32[5,32], index: 6, kind: input, shape index: {}]   ;;  %s1279_s7 = inlined_call_operand.vmem [shape: f32[4], index: 7, kind: input, shape index: {}]   ;;  %s1280_s8 = inlined_call_operand.hbm [shape: f32[2,8,32], index: 8, kind: output, shape index: {0}]   ;;  %s1281_s9 = inlined_call_operand.hbm [shape: f32[2,8,32], index: 9, kind: output, shape index: {1}]  }
   0x1   :  { %16 = vsyncpa [#allocation7], 0 }
   0x2   :  { %17 = vsyncpa [#allocation10], 0 }
   0x3   :  { %18 = vsyncpa [#allocation5], 0 }
   0x4   :  { %19 = vsyncpa [#allocation4], 0 }
   0x5   :  { %20 = vsyncpa [#allocation15], 0  ;;  %s1058_s30 = smov [#allocation6]   ;;  %s1059_s11 = smov [#allocation9]  }
   0x6   :  { %s38_s10 = sshll.u32 %s1058_s30, 4  ;;  %s65_s12 = sshll.u32 %s1059_s11, 4  ;;  %s39_s10 = int_to_ptr.vmem [resolvable:$true] %s38_s10  ;;  %s66_s12 = int_to_ptr.vmem [resolvable:$true] %s65_s12 }
   0x7   :  { %s902_s13 = scalar_lea.vmem %s39_s10, 256  ;;  %p907_p1 = scmp.lt.s32.totalorder %s39_s10, %s39_s10 }
   0x8   :  { %p903_p0 = scmp.ne.s32.totalorder %s39_s10, %s902_s13  ;;  %p908_p2 = scmp.lt.s32.totalorder %s902_s13, %s902_s13 }
   0xa   :  { %p909_p3 = por %p908_p2, %p907_p1 }
   0xc   :  { %p910_p4 = pnand %p909_p3, %p903_p0 }
   0xe   :  { %913 = shalt.err (!%p910_p4)
}
   0xf   :  { %s1060_s14 = smov 128   ;;  %s1061_s15 = smov 8  }
  0x10   :  { %44 = dma.hbm_to_vmem [thread:$0]  %s1273_s1, 256, %s39_s10, [#allocation7], %s1060_s14, %s1060_s14, %s1061_s15  }
  0x11   :  { %s922_s18 = scalar_lea.vmem %s66_s12, 128  ;;  %p927_p6 = scmp.lt.s32.totalorder %s66_s12, %s66_s12 }
  0x12   :  { %p923_p5 = scmp.ne.s32.totalorder %s66_s12, %s922_s18  ;;  %p928_p7 = scmp.lt.s32.totalorder %s922_s18, %s922_s18 }
  0x14   :  { %p929_p8 = por %p928_p7, %p927_p6 }
  0x16   :  { %p930_p9 = pnand %p929_p8, %p923_p5 }
  0x18   :  { %933 = shalt.err (!%p930_p9)
}
  0x19   :  { %68 = dma.hbm_to_vmem [thread:$0]  %s1276_s4, 128, %s66_s12, [#allocation10]  }
  0x1a   :  { %s1062_s21 = smov [#allocation2]   ;;  %s1063_s23 = smov [#allocation8]  }
  0x1b   :  { %s26_s22 = sshll.u32 %s1062_s21, 4  ;;  %s52_s24 = sshll.u32 %s1063_s23, 4  ;;  %s27_s22 = int_to_ptr.vmem [resolvable:$true] %s26_s22  ;;  %s53_s24 = int_to_ptr.vmem [resolvable:$true] %s52_s24 }
  0x1c   :  { %s942_s25 = scalar_lea.vmem %s27_s22, 256  ;;  %p947_p11 = scmp.lt.s32.totalorder %s27_s22, %s27_s22 }
  0x1d   :  { %p943_p10 = scmp.ne.s32.totalorder %s27_s22, %s942_s25  ;;  %p948_p12 = scmp.lt.s32.totalorder %s942_s25, %s942_s25 }
  0x1f   :  { %p949_p13 = por %p948_p12, %p947_p11 }
  0x21   :  { %p950_p0 = pnand %p949_p13, %p943_p10 }
  0x23   :  { %953 = shalt.err (!%p950_p0)
}
  0x24   :  { %32 = dma.hbm_to_vmem [thread:$0]  %s1272_s0, 256, %s27_s22, [#allocation3], %s1060_s14, %s1060_s14, %s1061_s15  }
  0x25   :  { %s962_s4 = scalar_lea.vmem %s53_s24, 256  ;;  %p967_p2 = scmp.lt.s32.totalorder %s53_s24, %s53_s24 }
  0x26   :  { %p963_p1 = scmp.ne.s32.totalorder %s53_s24, %s962_s4  ;;  %p968_p3 = scmp.lt.s32.totalorder %s962_s4, %s962_s4 }
  0x28   :  { %p969_p4 = por %p968_p3, %p967_p2 }
  0x2a   :  { %p970_p5 = pnand %p969_p4, %p963_p1 }
  0x2c   :  { %973 = shalt.err (!%p970_p5)
}
  0x2d   :  { %s1064_s27 = smov 64   ;;  %s1065_s28 = smov 4  }
  0x2e   :  { %58 = dma.hbm_to_vmem [thread:$0]  %s1275_s3, 256, %s53_s24, [#allocation7], %s1064_s27, %s1064_s27, %s1065_s28  }
  0x2f   :  { %s89_s12 = sshll.u32 %s1279_s7, 4  ;;  %s1066_s13 = smov [#allocation11]   ;;  %s90_s12 = int_to_ptr.vmem [resolvable:$true] %s89_s12 }
  0x30   :  { %s74_s16 = sshll.u32 %s1066_s13, 4  ;;  %s75_s16 = int_to_ptr.vmem [resolvable:$true] %s74_s16 }
  0x31   :  { %s982_s0 = scalar_lea.vmem %s75_s16, 256  ;;  %p987_p7 = scmp.lt.s32.totalorder %s75_s16, %s75_s16 }
  0x32   :  { %p983_p6 = scmp.ne.s32.totalorder %s75_s16, %s982_s0  ;;  %p988_p8 = scmp.lt.s32.totalorder %s982_s0, %s982_s0 }
  0x34   :  { %p989_p9 = por %p988_p8, %p987_p7 }
  0x36   :  { %p990_p10 = pnand %p989_p9, %p983_p6 }
  0x38   :  { %993 = shalt.err (!%p990_p10)
}
  0x39   :  { %80 = dma.hbm_to_vmem [thread:$0]  %s1277_s5, 256, %s75_s16, [#allocation10], %s1064_s27, %s1064_s27, %s1065_s28  }
  0x3a   :  { %s994_s3 = scalar_lea.vmem %s90_s12, 16  ;;  %p999_p12 = scmp.lt.s32.totalorder %s90_s12, %s90_s12 }
  0x3b   :  { %p995_p11 = scmp.ne.s32.totalorder %s90_s12, %s994_s3  ;;  %p1000_p13 = scmp.lt.s32.totalorder %s994_s3, %s994_s3 }
  0x3d   :  { %p1001_p0 = por %p1000_p13, %p999_p12 }
  0x3f   :  { %p1002_p1 = pnand %p1001_p0, %p995_p11 }
  0x41   :  { %1005 = shalt.err (!%p1002_p1)
}
  0x42   :  { %s1067_s7 = smov [#allocation12]  }
  0x43   :  { %92 = dma.vmem_to_smem %s90_s12, 16, %s1067_s7, [#allocation5]  }
  0x44   :  { %1046 = dma.done.wait [#allocation3], 256  }
  0x45   :  { %1047 = vsyncadd [#allocation3], 4294967040 }
  0x46   :  { %1048 = dma.done.wait [#allocation7], 512  }
  0x47   :  { %1049 = vsyncadd [#allocation7], 4294966784 }
  0x48   :  { %1050 = dma.done.wait [#allocation10], 384  }
  0x49   :  { %1051 = vsyncadd [#allocation10], 4294966912 }
  0x4a   :  { %1052 = dma.done.wait [#allocation5], 16  }
  0x4b   :  { %1053 = vsyncadd [#allocation5], 4294967280 }
  0x4c   :  { %111 = sfence }
  0x4d   :  { %v1147_v0 = vld [vmem:[#allocation6 + $0x8] sm:$0xff]  ;;  %v768_v1 = vld [vmem:[#allocation9 + $0x1] ss:$0 sm:$0xff]  ;;  %vm143_vm0 = vcmask 261120   ;;  %v1153_v5 = vld [vmem:[#allocation2 + $0x8] sm:$0xff]  ;;  %v1068_v15 = vmov 0.0   ;;  %v220_v18 = vlaneseq }
  0x4e   :  { %v1149_v2 = vld [vmem:[#allocation6] sm:$0xff]  ;;  %v211_v3 = vmul.f32 %v768_v1, %v1147_v0  ;;  %v1155_v7 = vld [vmem:[#allocation2] sm:$0xff]  ;;  %v858_v14 = vld [vmem:[#allocation8 + $0x8] sm:$0xff]   ;;  %803 = vmatprep.subr.bf16.mxu0 %v1068_v15  ;;  %vm1069_vm1 = vmmov 0   ;;  %811 = vmatprep.subr.bf16.mxu1 %v1068_v15  ;;  %s119_s5 = sld [smem:[#allocation12]]  ;;  %vm255_vm2 = vcmask 64512  }
  0x4f   :  { %v210_v4 = vmul.f32 %v768_v1, %v1149_v2  ;;  %v767_v6 = vld [vmem:[#allocation9] ss:$0 sm:$0xff]  ;;  %807 = vmatprep.mubr.msk.bf16.mxu0 %vm1069_vm1, %v1068_v15  ;;  %804 = vmatpush3.bf16.msra.mxu0 %v858_v14  ;;  %v859_v16 = vld [vmem:[#allocation8] sm:$0xff]   ;;  %v126_v17 = vpack.c.bf16 %v1147_v0, %v1149_v2  ;;  %v221_v19 = vand.u32 127, %v220_v18  ;;  %v1176_v20 = vshrl.u32 %v220_v18, 7  ;;  %s762_s19 = sld [smem:[#allocation12 + $0x1]] }
  0x50   :  { %v199_v8 = vmul.f32 %v767_v6, %v1153_v5  ;;  %v198_v9 = vmul.f32 %v767_v6, %v1155_v7  ;;  %v215_v10 = vsel %vm143_vm0, %v211_v3, 0.0  ;;  %805 = vmatprep.subr.bf16.mxu0 %v1068_v15  ;;  %813 = vmatprep.mubr.msk.bf16.mxu1 %vm1069_vm1, %v1068_v15  ;;  %v766_v45 = vld [vmem:[#allocation9 + $0x4] ss:$0 sm:$0xff]  ;;  %vm285_vm3 = vcmask 1043456   ;;  %v772_v1 = vld [vmem:[#allocation9 + $0x3] ss:$0 sm:$0xff] }
  0x51   :  { %v212_v11 = vsel %vm143_vm0, %v210_v4, 0.0  ;;  %216 = vadd.xlane.f32.xlu1 %v215_v10  ;;  %v1179_v21 = vsub.s32 %v221_v19, %v1176_v20  ;;  %v771_v3 = vld [vmem:[#allocation9 + $0x2] ss:$0 sm:$0xff]  ;;  %v386_v18 = vmul.f32 %v772_v1, %v1153_v5  ;;  %s775_s1 = sld [smem:[#allocation12 + $0x2]] }
  0x52   :  { %213 = vadd.xlane.f32.xlu0 %v212_v11  ;;  %v203_v12 = vsel %vm143_vm0, %v199_v8, 0.0  ;;  %v200_v13 = vsel %vm143_vm0, %v198_v9, 0.0  ;;  %v385_v8 = vmul.f32 %v772_v1, %v1155_v7  ;;  %v114_v1 = vld [vmem:[%s1274_s2 + $0x1] sm:$0x1] }
  0x53   :  { %806 = vmatpush3.bf16.msra.mxu0 %v859_v16  ;;  %vm548_vm5 = vcmp.ne.f32.partialorder %v114_v1, 0.0 }
  0x54   :  { %823 = vmatprep.subr.bf16.mxu0 %v1068_v15  ;;  %v252_v28 = vstv %s119_s5 }
  0x55   :  { %204 = vadd.xlane.f32.xlu1 %v203_v12 }
  0x56   :  { %201 = vadd.xlane.f32.xlu0 %v200_v13  ;;  %808 = vmatmul.mubr.msk.bf16.vlgmr.msra.gmra.mxu0 %vm143_vm0, %v126_v17 }
  0x57   :  { %827 = vmatprep.mubr.msk.bf16.mxu0 %vm1069_vm1, %v1068_v15 }
  0xda   :  { %v217_v22 = vpop.xlane.xlu1 %216 }
  0xdb   :  { %v214_v23 = vpop.xlane.xlu0 %213  ;;  %v229_v24 = vrot.slane %v217_v22, %v1179_v21 }
  0xdc   :  { %v225_v25 = vrot.slane %v214_v23, %v1179_v21 }
  0xde   :  { %v205_v26 = vpop.xlane.xlu1 %204 }
  0xdf   :  { %v202_v27 = vpop.xlane.xlu0 %201  ;;  %v251_v29 = vadd.f32 %v229_v24, %v205_v26 }
  0xe0   :  { %v250_v30 = vadd.f32 %v225_v25, %v202_v27  ;;  %v860_v27 = vld [vmem:[#allocation11 + $0x8] sm:$0xff]  }
  0xe1   :  { %v254_v31 = vadd.f32 %v252_v28, %v251_v29  ;;  %824 = vmatpush3.bf16.msra.mxu0 %v860_v27  ;;  %v395_v29 = vstv %s762_s19 }
  0xe2   :  { %v253_v32 = vadd.f32 %v252_v28, %v250_v30  ;;  %825 = vmatprep.subr.bf16.mxu0 %v1068_v15  ;;  %v861_v28 = vld [vmem:[#allocation11] sm:$0xff]  }
  0xe3   :  { %v259_v33 = vsel %vm255_vm2, %v254_v31, -inf }
  0xe4   :  { %v256_v34 = vsel %vm255_vm2, %v253_v32, -inf  ;;  %260 = vmax.xlane.f32.xlu1 %v259_v33 }
  0xe5   :  { %257 = vmax.xlane.f32.xlu0 %v256_v34  ;;  %826 = vmatpush3.bf16.msra.mxu0 %v861_v28 }
  0xe6   :  { %837 = vmatprep.subr.bf16.mxu0 %v1068_v15 }
 0x116   :  { %v181_v46 = vpop.f32.mrf.mxu0 }
 0x117   :  { %v192_v47 = vadd.f32 %v766_v45, %v181_v46 }
 0x118   :  { %v809_v48 = vpop.f32.mrf.mxu0 }
 0x119   :  { %v280_v49 = vpack.c.bf16 %v192_v47, %v192_v47 }
 0x11a   :  { %v184_v50 = vpop.f32.mrf.mxu0 }
 0x11b   :  { %v193_v51 = vadd.f32 %v766_v45, %v184_v50  ;;  %v287_v52 = vsel %vm285_vm3, %v280_v49, 0  ;;  %v781_v45 = vld [vmem:[%s1278_s6] ss:$0 sm:$0xff] }
 0x11c   :  { %v810_v53 = vpop.f32.mrf.mxu0  ;;  %812 = vmatpush3.bf16.msra.mxu1 %v287_v52  ;;  %v498_v48 = vmul.f32 %v781_v45, %v1149_v2 }
 0x11d   :  { %817 = vmatprep.subr.bf16.mxu1 %v1068_v15  ;;  %v281_v57 = vpack.c.bf16 %v193_v51, %v193_v51 }
 0x11e   :  { %v500_v53 = vsel %vm143_vm0, %v498_v48, 0.0 }
 0x11f   :  { %v333_v61 = vsel %vm285_vm3, %v281_v57, 0  ;;  %v499_v57 = vmul.f32 %v781_v45, %v1147_v0 }
 0x16d   :  { %v261_v35 = vpop.xlane.xlu1 %260 }
 0x16e   :  { %v258_v36 = vpop.xlane.xlu0 %257  ;;  %v263_v37 = vsub.f32 %v254_v31, %v261_v35 }
 0x16f   :  { %v262_v38 = vsub.f32 %v253_v32, %v258_v36 }
 0x170   :  { %v266_v39 = vmul.f32 1.442695, %v263_v37 }
 0x171   :  { %v264_v40 = vmul.f32 1.442695, %v262_v38 }
 0x172   :  { %862 = vpow2.f32 %v266_v39 }
 0x173   :  { %864 = vpow2.f32 %v264_v40 }
 0x17f   :  { %v863_v41 = vpop.eup %862 }
 0x180   :  { %v865_v42 = vpop.eup %864  ;;  %v271_v43 = vsel %vm255_vm2, %v863_v41, 0.0 }
 0x181   :  { %272 = vadd.xlane.f32.xlu1 %v271_v43  ;;  %v268_v44 = vsel %vm255_vm2, %v865_v42, 0.0 }
 0x182   :  { %269 = vadd.xlane.f32.xlu0 %v268_v44  ;;  %v782_v44 = vld [vmem:[%s1278_s6 + $0x1] ss:$0 sm:$0xff] }
 0x20a   :  { %v273_v55 = vpop.xlane.xlu1 %272 }
 0x20b   :  { %v270_v54 = vpop.xlane.xlu0 %269 }
 0x20c   :  { %866 = vrcp.f32 %v270_v54 }
 0x20d   :  { %868 = vrcp.f32 %v273_v55 }
 0x219   :  { %v867_v56 = vpop.eup %866 }
 0x21a   :  { %v276_v58 = vmul.f32 %v867_v56, %v865_v42  ;;  %v869_v60 = vpop.eup %868 }
 0x21b   :  { %v277_v62 = vmul.f32 %v869_v60, %v863_v41  ;;  %v553_v60 = vsub.s32 0, %v1176_v20 }
 0x21c   :  { %v278_v59 = vpack.c.bf16 %v276_v58, %v276_v58 }
 0x21d   :  { %v279_v63 = vpack.c.bf16 %v277_v62, %v277_v62 }
 0x21e   :  { %814 = vmatmul.mubr.msk.bf16.vlgmr.msra.gmra.mxu1 %vm255_vm2, %v278_v59  ;;  %v113_v59 = vld [vmem:[%s1274_s2] sm:$0x1] }
 0x21f   :  { %818 = vmatpush3.bf16.msra.mxu1 %v333_v61  ;;  %819 = vmatprep.mubr.msk.bf16.mxu1 %vm1069_vm1, %v1068_v15  ;;  %vm547_vm4 = vcmp.ne.f32.partialorder %v113_v59, 0.0  ;;  %v1070_v61 = vmov 0  }
 0x220   :  { %831 = vmatprep.subr.bf16.mxu1 %v1068_v15  ;;  %v549_v62 = vsel %vm547_vm4, 1, %v1070_v61 }
 0x226   :  { %820 = vmatmul.mubr.msk.bf16.vlgmr.msra.gmra.mxu1 %vm255_vm2, %v279_v63 }
 0x227   :  { %833 = vmatprep.mubr.msk.bf16.mxu1 %vm1069_vm1, %v1068_v15 }
 0x2de   :  { %v323_v4 = vpop.f32.mrf.mxu1 }
 0x2df   :  { %v324_v6 = vadd.f32 %v323_v4, %v1155_v7  ;;  %v544_v4 = vstv %s775_s1 }
 0x2e0   :  { %v815_v9 = vpop.f32.mrf.mxu1 }
 0x2e1   :  { %v379_v10 = vmul.f32 %v771_v3, %v324_v6 }
 0x2e2   :  { %v326_v11 = vpop.f32.mrf.mxu1 }
 0x2e3   :  { %v387_v12 = vadd.f32 %v385_v8, %v379_v10  ;;  %v550_v10 = vsel %vm548_vm5, 1, %v1070_v61 }
 0x2e4   :  { %v816_v13 = vpop.f32.mrf.mxu1 }
 0x2e5   :  { %v389_v14 = vsel %vm143_vm0, %v387_v12, 0.0  ;;  %v558_v13 = vrot.slane %v550_v10, %v553_v60 }
 0x2e6   :  { %390 = vadd.xlane.f32.xlu0 %v389_v14  ;;  %v369_v16 = vpop.f32.mrf.mxu1 }
 0x2e7   :  { %v370_v17 = vadd.f32 %v369_v16, %v1153_v5  ;;  %vm560_vm7 = vcmp.eq.s32.totalorder %v558_v13, 1 }
 0x2e8   :  { %v821_v19 = vpop.f32.mrf.mxu1 }
 0x2e9   :  { %v380_v22 = vmul.f32 %v771_v3, %v370_v17  ;;  %v554_v3 = vrot.slane %v549_v62, %v553_v60 }
 0x2ea   :  { %v372_v23 = vpop.f32.mrf.mxu1 }
 0x2eb   :  { %v388_v24 = vadd.f32 %v386_v18, %v380_v22  ;;  %vm559_vm6 = vcmp.eq.s32.totalorder %v554_v3, 1  ;;  %v780_v23 = vld [vmem:[%s1278_s6 + $0x4] ss:$0 sm:$0xff] }
 0x2ec   :  { %v822_v25 = vpop.f32.mrf.mxu1 }
 0x2ed   :  { %v392_v26 = vsel %vm143_vm0, %v388_v24, 0.0 }
 0x2ee   :  { %393 = vadd.xlane.f32.xlu1 %v392_v26 }
 0x36f   :  { %v391_v30 = vpop.xlane.xlu0 %390 }
 0x370   :  { %v396_v31 = vadd.f32 %v395_v29, %v391_v30 }
 0x372   :  { %v773_v32 = vmul.f32 -1.442695, %v396_v31 }
 0x374   :  { %870 = vpow2.f32 %v773_v32 }
 0x377   :  { %v394_v33 = vpop.xlane.xlu1 %393 }
 0x378   :  { %v397_v34 = vadd.f32 %v395_v29, %v394_v33 }
 0x37a   :  { %v774_v35 = vmul.f32 -1.442695, %v397_v34 }
 0x37c   :  { %872 = vpow2.f32 %v774_v35 }
 0x381   :  { %v871_v36 = vpop.eup %870 }
 0x382   :  { %v404_v37 = vadd.f32 1.0, %v871_v36 }
 0x384   :  { %874 = vrcp.f32 %v404_v37 }
 0x389   :  { %v873_v38 = vpop.eup %872 }
 0x38a   :  { %v405_v39 = vadd.f32 1.0, %v873_v38 }
 0x38c   :  { %876 = vrcp.f32 %v405_v39 }
 0x391   :  { %v875_v40 = vpop.eup %874 }
 0x392   :  { %v412_v41 = vsub.f32 2.0, %v875_v40  ;;  %v410_v42 = vmul.f32 %v875_v40, %v324_v6 }
 0x394   :  { %v414_v43 = vmul.f32 %v412_v41, %v1155_v7 }
 0x396   :  { %v416_v46 = vadd.f32 %v414_v43, %v410_v42 }
 0x398   :  { %v510_v47 = vmul.f32 %v782_v44, %v416_v46  ;;  %418 = vst.msk [vmem:[#allocation13] sm:$0xff] %vm143_vm0, %v416_v46 }
 0x399   :  { %v877_v49 = vpop.eup %876 }
 0x39a   :  { %v413_v50 = vsub.f32 2.0, %v877_v49  ;;  %v512_v51 = vsel %vm143_vm0, %v510_v47, 0.0  ;;  %v411_v7 = vmul.f32 %v877_v49, %v370_v17 }
 0x39b   :  { %513 = vadd.xlane.f32.xlu0 %v512_v51  ;;  %v786_v51 = vld [vmem:[%s1278_s6 + $0x3] ss:$0 sm:$0xff] }
 0x39c   :  { %v415_v52 = vmul.f32 %v413_v50, %v1153_v5  ;;  %v503_v5 = vsel %vm143_vm0, %v499_v57, 0.0  ;;  %v692_v62 = vmul.f32 %v786_v51, %v1147_v0 }
 0x39e   :  { %v417_v54 = vadd.f32 %v415_v52, %v411_v7  ;;  %v785_v7 = vld [vmem:[%s1278_s6 + $0x2] ss:$0 sm:$0xff]  ;;  %s1071_s6 = smov [#allocation13]  }
 0x39f   :  { %501 = vadd.xlane.f32.xlu0 %v500_v53  ;;  %s731_s11 = sshll.u32 %s1071_s6, 4  ;;  %s732_s11 = int_to_ptr.vmem [resolvable:$true] %s731_s11 }
 0x3a0   :  { %v427_v55 = vpack.c.bf16 %v417_v54, %v416_v46  ;;  %419 = vst.msk [vmem:[#allocation13 + $0x8] sm:$0xff] %vm143_vm0, %v417_v54  ;;  %v511_v56 = vmul.f32 %v782_v44, %v417_v54  ;;  %v691_v54 = vmul.f32 %v786_v51, %v1149_v2  ;;  %s1006_s12 = scalar_lea.vmem %s732_s11, 256  ;;  %p1011_p3 = scmp.lt.s32.totalorder %s732_s11, %s732_s11 }
 0x3a1   :  { %p1007_p2 = scmp.ne.s32.totalorder %s732_s11, %s1006_s12  ;;  %p1012_p4 = scmp.lt.s32.totalorder %s1006_s12, %s1006_s12 }
 0x3a2   :  { %828 = vmatmul.mubr.msk.bf16.vlgmr.msra.gmra.mxu0 %vm143_vm0, %v427_v55  ;;  %v515_v58 = vsel %vm143_vm0, %v511_v56, 0.0 }
 0x3a3   :  { %516 = vadd.xlane.f32.xlu1 %v515_v58  ;;  %839 = vmatprep.mubr.msk.bf16.mxu0 %vm1069_vm1, %v1068_v15  ;;  %p1013_p5 = por %p1012_p4, %p1011_p3 }
 0x3a5   :  { %p1014_p6 = pnand %p1013_p5, %p1007_p2 }
 0x3a7   :  { %504 = vadd.xlane.f32.xlu1 %v503_v5 }
 0x424   :  { %v514_v63 = vpop.xlane.xlu0 %513 }
 0x425   :  { %v523_v15 = vrot.slane %v514_v63, %v1179_v21 }
 0x428   :  { %v502_v6 = vpop.xlane.xlu0 %501 }
 0x429   :  { %v542_v8 = vadd.f32 %v523_v15, %v502_v6 }
 0x42b   :  { %v545_v9 = vadd.f32 %v544_v4, %v542_v8 }
 0x42c   :  { %v517_v11 = vpop.xlane.xlu1 %516 }
 0x42d   :  { %v561_v12 = vsel %vm559_vm6, %v545_v9, -1e+09  ;;  %v527_v14 = vrot.slane %v517_v11, %v1179_v21 }
 0x42e   :  { %v563_v20 = vsel %vm255_vm2, %v561_v12, -inf }
 0x42f   :  { %564 = vmax.xlane.f32.xlu0 %v563_v20 }
 0x430   :  { %v505_v16 = vpop.xlane.xlu1 %504 }
 0x431   :  { %v543_v17 = vadd.f32 %v527_v14, %v505_v16 }
 0x433   :  { %v546_v18 = vadd.f32 %v544_v4, %v543_v17 }
 0x435   :  { %v562_v19 = vsel %vm560_vm7, %v546_v18, -1e+09 }
 0x436   :  { %v566_v22 = vsel %vm255_vm2, %v562_v19, -inf }
 0x437   :  { %567 = vmax.xlane.f32.xlu1 %v566_v22 }
 0x462   :  { %v481_v24 = vpop.f32.mrf.mxu0 }
 0x463   :  { %v492_v25 = vadd.f32 %v780_v23, %v481_v24 }
 0x464   :  { %v829_v26 = vpop.f32.mrf.mxu0 }
 0x465   :  { %v587_v27 = vpack.c.bf16 %v492_v25, %v492_v25 }
 0x466   :  { %v484_v28 = vpop.f32.mrf.mxu0 }
 0x467   :  { %v593_v21 = vsel %vm285_vm3, %v587_v27, 0  ;;  %v493_v29 = vadd.f32 %v780_v23, %v484_v28 }
 0x468   :  { %v830_v30 = vpop.f32.mrf.mxu0  ;;  %832 = vmatpush3.bf16.msra.mxu1 %v593_v21 }
 0x469   :  { %v588_v31 = vpack.c.bf16 %v493_v29, %v493_v29 }
 0x46b   :  { %v639_v32 = vsel %vm285_vm3, %v588_v31, 0 }
 0x46c   :  { %838 = vmatpush3.bf16.msra.mxu0 %v639_v32 }
 0x4b8   :  { %v565_v33 = vpop.xlane.xlu0 %564 }
 0x4b9   :  { %v569_v34 = vsub.f32 %v561_v12, %v565_v33 }
 0x4bb   :  { %v571_v35 = vmul.f32 1.442695, %v569_v34 }
 0x4bd   :  { %878 = vpow2.f32 %v571_v35 }
 0x4c0   :  { %v568_v36 = vpop.xlane.xlu1 %567 }
 0x4c1   :  { %v570_v37 = vsub.f32 %v562_v19, %v568_v36 }
 0x4c3   :  { %v573_v38 = vmul.f32 1.442695, %v570_v37 }
 0x4c5   :  { %880 = vpow2.f32 %v573_v38 }
 0x4ca   :  { %v879_v39 = vpop.eup %878 }
 0x4cb   :  { %v575_v40 = vsel %vm255_vm2, %v879_v39, 0.0 }
 0x4cc   :  { %576 = vadd.xlane.f32.xlu0 %v575_v40 }
 0x4d2   :  { %v881_v41 = vpop.eup %880 }
 0x4d3   :  { %v578_v42 = vsel %vm255_vm2, %v881_v41, 0.0 }
 0x4d4   :  { %579 = vadd.xlane.f32.xlu1 %v578_v42 }
 0x555   :  { %v577_v43 = vpop.xlane.xlu0 %576 }
 0x556   :  { %882 = vrcp.f32 %v577_v43 }
 0x55d   :  { %v580_v44 = vpop.xlane.xlu1 %579 }
 0x55e   :  { %884 = vrcp.f32 %v580_v44 }
 0x563   :  { %v883_v45 = vpop.eup %882 }
 0x564   :  { %v583_v46 = vmul.f32 %v883_v45, %v879_v39 }
 0x566   :  { %v585_v47 = vpack.c.bf16 %v583_v46, %v583_v46 }
 0x568   :  { %834 = vmatmul.mubr.msk.bf16.vlgmr.msra.gmra.mxu1 %vm255_vm2, %v585_v47 }
 0x56b   :  { %v885_v48 = vpop.eup %884 }
 0x56c   :  { %v584_v49 = vmul.f32 %v885_v48, %v881_v41 }
 0x56e   :  { %v586_v50 = vpack.c.bf16 %v584_v49, %v584_v49 }
 0x570   :  { %840 = vmatmul.mubr.msk.bf16.vlgmr.msra.gmra.mxu0 %vm255_vm2, %v586_v50 }
 0x628   :  { %v629_v52 = vpop.f32.mrf.mxu1 }
 0x629   :  { %v630_v53 = vadd.f32 %v629_v52, %v1149_v2 }
 0x62a   :  { %v835_v55 = vpop.f32.mrf.mxu1 }
 0x62b   :  { %v685_v56 = vmul.f32 %v785_v7, %v630_v53 }
 0x62c   :  { %v632_v57 = vpop.f32.mrf.mxu1 }
 0x62d   :  { %v693_v58 = vadd.f32 %v691_v54, %v685_v56 }
 0x62e   :  { %v836_v5 = vpop.f32.mrf.mxu1 }
 0x62f   :  { %v695_v59 = vsel %vm143_vm0, %v693_v58, 0.0 }
 0x630   :  { %v675_v60 = vpop.f32.mrf.mxu0  ;;  %696 = vadd.xlane.f32.xlu0 %v695_v59 }
 0x631   :  { %v676_v61 = vadd.f32 %v675_v60, %v1147_v0 }
 0x632   :  { %v841_v63 = vpop.f32.mrf.mxu0 }
 0x633   :  { %v686_v1 = vmul.f32 %v785_v7, %v676_v61 }
 0x634   :  { %v678_v3 = vpop.f32.mrf.mxu0 }
 0x635   :  { %v694_v15 = vadd.f32 %v692_v62, %v686_v1 }
 0x636   :  { %v842_v4 = vpop.f32.mrf.mxu0 }
 0x637   :  { %v698_v6 = vsel %vm143_vm0, %v694_v15, 0.0 }
 0x638   :  { %699 = vadd.xlane.f32.xlu1 %v698_v6 }
 0x639   :  { %1017 = shalt.err (!%p1014_p6)
}
 0x63a   :  { %737 = dma.vmem_to_hbm [thread:$0]  %s732_s11, 256, %s1280_s8, [#allocation4], %s1060_s14, %s1060_s14, %s1061_s15  }
 0x63b   :  { %s776_s0 = sld [smem:[#allocation12 + $0x3]]  ;;  %s1072_s8 = smov [#allocation14]  }
 0x63c   :  { %s743_s17 = sshll.u32 %s1072_s8, 4  ;;  %s744_s17 = int_to_ptr.vmem [resolvable:$true] %s743_s17 }
 0x63d   :  { %s1026_s18 = scalar_lea.vmem %s744_s17, 256  ;;  %p1031_p8 = scmp.lt.s32.totalorder %s744_s17, %s744_s17 }
 0x63e   :  { %p1027_p7 = scmp.ne.s32.totalorder %s744_s17, %s1026_s18  ;;  %p1032_p9 = scmp.lt.s32.totalorder %s1026_s18, %s1026_s18 }
 0x640   :  { %p1033_p10 = por %p1032_p9, %p1031_p8 }
 0x641   :  { %v701_v8 = vstv %s776_s0 }
 0x642   :  { %p1034_p11 = pnand %p1033_p10, %p1027_p7 }
 0x6b9   :  { %v697_v9 = vpop.xlane.xlu0 %696 }
 0x6ba   :  { %v702_v10 = vadd.f32 %v701_v8, %v697_v9 }
 0x6bc   :  { %v787_v11 = vmul.f32 -1.442695, %v702_v10 }
 0x6be   :  { %886 = vpow2.f32 %v787_v11 }
 0x6c1   :  { %v700_v12 = vpop.xlane.xlu1 %699 }
 0x6c2   :  { %v703_v20 = vadd.f32 %v701_v8, %v700_v12 }
 0x6c4   :  { %v788_v13 = vmul.f32 -1.442695, %v703_v20 }
 0x6c6   :  { %888 = vpow2.f32 %v788_v13 }
 0x6cb   :  { %v887_v14 = vpop.eup %886 }
 0x6cc   :  { %v710_v16 = vadd.f32 1.0, %v887_v14 }
 0x6ce   :  { %890 = vrcp.f32 %v710_v16 }
 0x6d3   :  { %v889_v17 = vpop.eup %888 }
 0x6d4   :  { %v711_v18 = vadd.f32 1.0, %v889_v17 }
 0x6d6   :  { %892 = vrcp.f32 %v711_v18 }
 0x6db   :  { %v891_v19 = vpop.eup %890 }
 0x6dc   :  { %v718_v22 = vsub.f32 2.0, %v891_v19  ;;  %v716_v23 = vmul.f32 %v891_v19, %v630_v53 }
 0x6de   :  { %v720_v24 = vmul.f32 %v718_v22, %v1149_v2 }
 0x6e0   :  { %v722_v25 = vadd.f32 %v720_v24, %v716_v23 }
 0x6e2   :  { %724 = vst.msk [vmem:[#allocation14] sm:$0xff] %vm143_vm0, %v722_v25 }
 0x6e3   :  { %v893_v26 = vpop.eup %892 }
 0x6e4   :  { %v719_v27 = vsub.f32 2.0, %v893_v26  ;;  %v717_v28 = vmul.f32 %v893_v26, %v676_v61 }
 0x6e6   :  { %v721_v21 = vmul.f32 %v719_v27, %v1147_v0 }
 0x6e8   :  { %v723_v29 = vadd.f32 %v721_v21, %v717_v28 }
 0x6ea   :  { %725 = vst.msk [vmem:[#allocation14 + $0x8] sm:$0xff] %vm143_vm0, %v723_v29 }
 0x6eb   :  { %1037 = shalt.err (!%p1034_p11)
}
 0x6ec   :  { %749 = dma.vmem_to_hbm [thread:$0]  %s744_s17, 256, %s1281_s9, [#allocation15], %s1060_s14, %s1060_s14, %s1061_s15  }
 0x6ed   :  { %1054 = dma.done.wait [#allocation4], 256  }
 0x6ee   :  { %1055 = vsyncadd [#allocation4], 4294967040 }
 0x6ef   :  { %1056 = dma.done.wait [#allocation15], 256  }
 0x6f0   :  { %1057 = vsyncadd [#allocation15], 4294967040 }
 0x6f1   :  { %756 = vsyncpa [#allocation3], 1 }
 0x6f2   :  { %757 = vsyncpa [#allocation7], 1 }
 0x6f3   :  { %758 = vsyncpa [#allocation10], 1 }
 0x6f4   :  { %759 = vsyncpa [#allocation4], 1 }
 0x6f5   :  { %760 = vsyncpa [#allocation15], 1 }
 0x6f6   :  { %761 = vsyncpa [#allocation5], 1 }

</bundles_post_ra>
